<compile_context>
chip_gen: v6e
topology: v6e:2x2x1
jax: 0.10.0
libtpu: 0.0.40
codegen_flags: <defaults>
</compile_context>

<pallas_src>
import functools

import numpy as np
import jax
import jax.numpy as jnp
from jax.experimental import pallas as pl
from jax.experimental.pallas import tpu as pltpu


# ------------------------------- kernels ----------------------------------- #

def _gridmask_mul_kernel(x_ref, m_ref, o_ref):
    # x_ref: (BR, BC) chunk of planes, m_ref: (1, BC) shared mask row
    # (sublane-broadcast across the BR planes).
    o_ref[...] = x_ref[...] * m_ref[...]


def _gridmask_blend_kernel(x_ref, m_ref, om_ref, o_ref):
    # om_ref already holds offset * (1 - mask)  ->  2 VALU ops / element.
    o_ref[...] = x_ref[...] * m_ref[...] + om_ref[...]


# --------------------------- index maps (module-level, cache-friendly) ----- #

def _plane_index_map(i, j):
    return (i, j)


def _bcast_index_map(i, j):
    return (0, j)


# ------------------------------- tiling ------------------------------------ #

# Total VMEM working-set budget (2x in + 2x out + double-buffered constants).
# 12 MiB fits under v5e's 16 MiB default scoped VMEM with headroom and is far
# below v6e/v7x scoped limits; blocks come out at ~2-3 MiB as recommended.
_DEFAULT_VMEM_BUDGET = 12 * 1024 * 1024


def _choose_tiling(nc, hw, itemsize, n_bcast, vmem_budget, min_steps):
    """Pick (BR, BC): BR planes per block (sublane-aligned divisor of nc, or nc)
    and BC lane chunk of H*W (multiple of 128 dividing hw, or hw itself).

    Preference order: working set fits the VMEM budget; >= min_steps grid steps
    (so the pipeline and both v7x TensorCores stay busy); then the largest
    block to amortize the ~0.35 us per-grid-step overhead.
    """
    sub = {1: 32, 2: 16, 4: 8}.get(itemsize, 8)
    row_divs = sorted({d for d in range(sub, nc + 1, sub) if nc % d == 0} | {nc})
    lane_divs = sorted({d for d in range(128, hw + 1, 128) if hw % d == 0} | {hw})
    # NOTE: if hw is not a multiple of 128 the only lane option is the full
    # plane; for pathological (huge, odd-sized) planes this can exceed the
    # budget and fall back to the least-bad option below.
    best, best_key = None, None
    for br in row_divs:
        for bc in lane_divs:
            pad_rows = -(-br // sub) * sub              # VMEM sublane padding
            x_blk = pad_rows * bc * itemsize            # one x / out buffer
            cst_blk = sub * bc * itemsize               # (1, bc) block pads to `sub` rows
            wset = 4 * x_blk + 2 * n_bcast * cst_blk    # 2x in + 2x out + 2x per constant
            fits = wset <= vmem_budget
            steps = (nc // br) * (hw // bc)
            key = (fits, min(steps, min_steps),
                   (br * bc * itemsize) if fits else -wset)
            if best_key is None or key > best_key:
                best_key, best = key, (br, bc)
    return best


# --------------------------- cached pallas_call builder -------------------- #

@functools.lru_cache(maxsize=None)
def _build_gridmask_call(nc, hw, br, bc, dtype_name, has_offset, donate_x):
    dtype = np.dtype(dtype_name)
    grid = (nc // br, hw // bc)
    in_specs = [pl.BlockSpec((br, bc), _plane_index_map),
                pl.BlockSpec((1, bc), _bcast_index_map)]
    if has_offset:
        in_specs.append(pl.BlockSpec((1, bc), _bcast_index_map))
    kernel = _gridmask_blend_kernel if has_offset else _gridmask_mul_kernel
    kwargs = {"input_output_aliases": {0: 0}} if donate_x else {}
    return pl.pallas_call(
        kernel,
        out_shape=jax.ShapeDtypeStruct((nc, hw), dtype),
        grid=grid,
        in_specs=in_specs,
        out_specs=pl.BlockSpec((br, bc), _plane_index_map),
        compiler_params=pltpu.CompilerParams(
            dimension_semantics=("parallel", "parallel")),
        **kwargs,
    )


# ------------------------------- wrapper ------------------------------------ #

def gridmask_pallas(x, mask_row, off_masked_row=None, *,
                    vmem_budget=_DEFAULT_VMEM_BUDGET, min_steps=4,
                    donate_x=False):
    """Apply GridMask to x (N, C, H, W).

    mask_row:       device array (1, H*W), x.dtype, the 0/1 (or inverted) mask.
    off_masked_row: device array (1, H*W) holding offset*(1-mask), or None.
    """
    n, c, h, w = x.shape
    nc, hw = n * c, h * w
    itemsize = np.dtype(x.dtype).itemsize
    has_offset = off_masked_row is not None
    br, bc = _choose_tiling(nc, hw, itemsize, 2 if has_offset else 1,
                            vmem_budget, min_steps)
    call = _build_gridmask_call(nc, hw, br, bc, np.dtype(x.dtype).name,
                                has_offset, donate_x)
    x2 = x.reshape(nc, hw)
    args = (x2, mask_row, off_masked_row) if has_offset else (x2, mask_row)
    return call(*args).reshape(n, c, h, w)


# --------------------------- host-side mask construction ------------------- #

def _compute_mask(h, w, d, l, st_h, st_w, use_h, use_w, mode):
    """Exact host-side mask construction (matches the torch/numpy reference)."""
    hh, ww = int(1.5 * h), int(1.5 * w)
    mask = np.ones((hh, ww), np.float32)
    if use_h:
        for i in range(hh // d):
            s = d * i + st_h
            t = min(s + l, hh)
            mask[s:t, :] = 0.0
    if use_w:
        for i in range(ww // d):
            s = d * i + st_w
            t = min(s + l, ww)
            mask[:, s:t] = 0.0
    mask = mask[(hh - h) // 2:(hh - h) // 2 + h,
                (ww - w) // 2:(ww - w) // 2 + w]
    if mode == 1:
        mask = 1.0 - mask
    return np.ascontiguousarray(mask, dtype=np.float32)


@functools.lru_cache(maxsize=128)
def _mask_row_device(h, w, d, l, st_h, st_w, use_h, use_w, mode, dtype_name):
    """Mask built on host, uploaded once per parameter set (lane-dense row)."""
    mask = _compute_mask(h, w, d, l, st_h, st_w, use_h, use_w, mode)
    return jnp.asarray(mask.reshape(1, h * w), dtype=np.dtype(dtype_name))


# ------------------------------- module port -------------------------------- #

class GridMask:
    """JAX/Pallas port of projects.mmdet3d_plugin...GridMask (forward only).

    All randomness is drawn host-side with numpy (as the torch module does),
    so the forward never blocks on device scalars before launching the kernel.
    """

    def __init__(self, use_h, use_w, rotate=1, offset=False, ratio=0.5,
                 mode=0, prob=1.0, seed=0, donate_x=False):
        self.use_h = bool(use_h)
        self.use_w = bool(use_w)
        self.rotate = rotate
        self.offset = offset
        self.ratio = ratio
        self.mode = mode
        self.st_prob = prob
        self.prob = prob
        self.donate_x = donate_x
        self._rng = np.random.default_rng(seed)

    def set_prob(self, epoch, max_epoch):
        self.prob = self.st_prob * epoch / max_epoch

    def sample_params(self, h, w):
        """Host-side draw of every random quantity the torch forward uses."""
        rng = self._rng
        applied = bool(rng.random() <= self.prob)
        d = int(rng.integers(2, h))
        l = min(max(int(d * self.ratio + 0.5), 1), d - 1)
        st_h = int(rng.integers(0, d))
        st_w = int(rng.integers(0, d))
        r = int(rng.integers(0, self.rotate))
        offset = None
        if self.offset:
            offset = (2.0 * (rng.random((h, w)) - 0.5)).astype(np.float32)
        return applied, d, l, st_h, st_w, r, offset

    def forward(self, x, training=True, params=None):
        n, c, h, w = x.shape
        if not training:
            return x
        if params is None:
            params = self.sample_params(h, w)
        applied, d, l, st_h, st_w, r, offset = params
        if not applied:
            return x
        # TODO(synk): PIL Image.rotate(r) for rotate > 1 has no clean Pallas
        # equivalent; the default rotate=1 always yields r == 0 (identity),
        # which is what we implement.
        assert r == 0, "mask rotation (rotate > 1) not supported in the Pallas port"
        dtype_name = np.dtype(x.dtype).name
        mask_row = _mask_row_device(h, w, d, l, st_h, st_w,
                                    self.use_h, self.use_w, self.mode, dtype_name)
        off_row = None
        if offset is not None:
            mask_np = _compute_mask(h, w, d, l, st_h, st_w,
                                    self.use_h, self.use_w, self.mode)
            off_masked = (offset * (1.0 - mask_np)).astype(np.float32)
            off_row = jnp.asarray(off_masked.reshape(1, h * w), dtype=x.dtype)
        return gridmask_pallas(x, mask_row, off_row, donate_x=self.donate_x)


# ------------------------------- reference ---------------------------------- #

def _reference(x_np, d, l, st_h, st_w, use_h, use_w, mode, offset_np):
    """Pure-numpy re-implementation of the torch forward (r == 0)."""
    mask = _compute_mask(x_np.shape[2], x_np.shape[3], d, l, st_h, st_w,
                         use_h, use_w, mode)
    mask_b = mask[None, None]
    out = x_np * mask_b
    if offset_np is not None:
        out = out + offset_np[None, None] * (1.0 - mask_b)
    return out


if __name__ == "__main__":
    key = jax.random.PRNGKey(0)
    n, c, h, w = 2, 4, 16, 16
    x = jax.random.normal(key, (n, c, h, w), dtype=jnp.float32)
    x_np = np.asarray(x)

    ok = True

    # Default config: use_h=True, use_w=True, offset=False, mode=0 (mul path).
    gm = GridMask(True, True, rotate=1, offset=False, ratio=0.5, mode=0,
                  prob=1.0, seed=0)
    params = gm.sample_params(h, w)
    out = jax.block_until_ready(gm.forward(x, training=True, params=params))
    applied, d, l, st_h, st_w, r, _ = params
    assert applied and r == 0
    ref = _reference(x_np, d, l, st_h, st_w, True, True, 0, None)
    ok &= bool(np.allclose(np.asarray(out), ref, atol=1e-5, rtol=1e-5))

    # offset=True + mode=1 exercises the precomputed-offset blend path.
    gm2 = GridMask(True, True, rotate=1, offset=True, ratio=0.5, mode=1,
                   prob=1.0, seed=1)
    params2 = gm2.sample_params(h, w)
    out2 = jax.block_until_ready(gm2.forward(x, training=True, params=params2))
    _, d2, l2, sh2, sw2, r2, off2 = params2
    assert r2 == 0
    ref2 = _reference(x_np, d2, l2, sh2, sw2, True, True, 1, off2)
    ok &= bool(np.allclose(np.asarray(out2), ref2, atol=1e-5, rtol=1e-5))

    if not ok:
        raise SystemExit("mismatch vs reference")
    print("KERNEL_OK")
</pallas_src>

<mosaic_0001>
module attributes {stable_mosaic.version = 11 : i64} {
  func.func @_gridmask_mul_kernel(%arg0: i32, %arg1: i32, %arg2: memref<8x128xf32, #tpu.memory_space<vmem>>, %arg3: memref<1x128xf32, #tpu.memory_space<vmem>>, %arg4: memref<8x128xf32, #tpu.memory_space<vmem>>) attributes {dimension_semantics = [#tpu.dimension_semantics<parallel>, #tpu.dimension_semantics<parallel>], iteration_bounds = array<i64: 1, 2>, scalar_prefetch = 0 : i64, scratch_operands = 0 : i64, tpu.core_type = #tpu.core_type<tc>, window_params = [{transform_indices = @transform_0, window_bounds = array<i64: 8, 128>}, {transform_indices = @transform_1, window_bounds = array<i64: 1, 128>}, {transform_indices = @transform_2, window_bounds = array<i64: 8, 128>}]} {
    %c0 = arith.constant 0 : index
    %c0_0 = arith.constant 0 : index
    %0 = vector.load %arg2[%c0, %c0_0] : memref<8x128xf32, #tpu.memory_space<vmem>>, vector<8x128xf32>
    %c0_1 = arith.constant 0 : index
    %c0_2 = arith.constant 0 : index
    %1 = vector.load %arg3[%c0_1, %c0_2] : memref<1x128xf32, #tpu.memory_space<vmem>>, vector<1x128xf32>
    %2 = vector.broadcast %1 : vector<1x128xf32> to vector<8x128xf32>
    %3 = arith.mulf %0, %2 : vector<8x128xf32>
    %c0_3 = arith.constant 0 : index
    %c0_4 = arith.constant 0 : index
    %4 = vector.load %arg4[%c0_3, %c0_4] : memref<8x128xf32, #tpu.memory_space<vmem>>, vector<8x128xf32>
    tpu.vector_store %arg4[%c0_3, %c0_4], %3 {strides = array<i32>} : memref<8x128xf32, #tpu.memory_space<vmem>>, vector<8x128xf32>,
    return
  }
  func.func @transform_0(%arg0: i32, %arg1: i32) -> (i32, i32) {
    %c0_i32 = arith.constant 0 : i32
    return %arg0, %arg1 : i32, i32
  }
  func.func @transform_1(%arg0: i32, %arg1: i32) -> (i32, i32) {
    %c0_i32 = arith.constant 0 : i32
    %c0_i32_0 = arith.constant 0 : i32
    return %c0_i32, %arg1 : i32, i32
  }
  func.func @transform_2(%arg0: i32, %arg1: i32) -> (i32, i32) {
    %c0_i32 = arith.constant 0 : i32
    return %arg0, %arg1 : i32, i32
  }
}

</mosaic_0001>

<bundles_post_ra>
// kernel: tpu_custom_call.1
= control target key start
LH: loop header
LB: loop body
LE: loop exit
PB: predicated region body
PF: predicated region fallthrough
CT: control target
= control target key end

     0   :  { %7 = vsyncpa [#allocation3], 0  ;;  %s745_s0 = inlined_call_operand.hbm [shape: f32[8,256], index: 0, kind: input, shape index: {}]   ;;  %s746_s1 = inlined_call_operand.hbm [shape: f32[1,256], index: 1, kind: input, shape index: {}]   ;;  %s747_s2 = inlined_call_operand.hbm [shape: f32[8,256], index: 2, kind: output, shape index: {}]  }
   0x1   :  { %9 = vsyncpa [#allocation3 + $0x1], 0 }
   0x2   :  { %10 = vsyncpa [#allocation6], 0 }
   0x3   :  { %12 = vsyncpa [#allocation6 + $0x1], 0 }
   0x4   :  { %13 = vsyncpa [#allocation4], 0 }
   0x5   :  { %15 = vsyncpa [#allocation4 + $0x1], 0  ;;  %s581_s9 = smov 0   ;;  %s583_s10 = smov 0  }
   0x6   :  { %s585_s11 = smov 0   ;;  %s587_s12 = smov 0  }
   0x7   :  { %s589_s13 = smov 0   ;;  %s591_s14 = smov 0  }
   0x8 LB: > { %s339_s15 = sadd.s32 4294967295, %s561_s14   ;;  %s340_s16 = sadd.s32 4294967294, %s561_s14   ;;  %s561_s14 = sphi %s591_s14, %s21_s14   ;;  %s557_s13 = sphi %s589_s13, %s759_s13   ;;  %s553_s12 = sphi %s587_s12, %s758_s12   ;;  %s549_s11 = sphi %s585_s11, %s757_s11   ;;  %s545_s10 = sphi %s583_s10, %s756_s10   ;;  %s541_s9 = sphi %s581_s9, %s755_s9  }
   0x9   : > { %s30_s17 = sadd.s32 1, %s557_s13  ;;  %s42_s18 = sadd.s32 1, %s549_s11 }
   0xa   : > { %p31_p0 = scmp.ge.s32.totalorder %s30_s17, 2  ;;  %p49_p1 = scmp.ne.s32.totalorder %s549_s11, %s545_s10 }
   0xb   : > { %p50_p2 = scmp.eq.s32.totalorder %s561_s14, 0  ;;  %p55_p3 = scmp.ne.s32.totalorder %s545_s10, %s541_s9 }
   0xc   : > { %s761_s17 = smov (%p31_p0, %s30_s17), 0  ;;  %p56_p5 = scmp.eq.s32.totalorder %s339_s15, 0 }
   0xd   : > { %p622_p4 = por %p50_p2, %p49_p1  ;;  %s38_s20 = ssub.s32 %s557_s13, %s761_s17 }
   0xe   : > { %p107_p6 = scmp.eq.s32.totalorder %s339_s15, 1  ;;  %p40_p7 = scmp.eq.s32.totalorder %s38_s20, 0 }
   0xf   : > { %p628_p8 = por %p56_p5, %p55_p3  ;;  %p113_p10 = scmp.eq.s32.totalorder %s340_s16, 1 }
  0x10   : > { %p632_p9 = por %p107_p6, %p49_p1  ;;  %p371_p13 = scmp.lt.s32.totalorder %s561_s14, 2 }
  0x11   : > { %s637_s23 = scalar_select %p40_p7, %s549_s11, %s42_s18  }
  0x12   : > { %p639_p11 = por %p113_p10, %p55_p3  ;;  %s646_s25 = sand.u32 1, %s549_s11  }
  0x13   : > { %s343_s26 = sshll.u32 %s646_s25, 3  ;;  %s344_s27 = sshll.u32 %s557_s13, 7 }
  0x14   : > { %s144_s30 = scalar_lea.hbm %s745_s0, %s344_s27  ;;  %s137_s3 = scalar_lea.vmem [#allocation2], %s343_s26 }
  0x15   : > { %s146_s4 = sshll.u32 %s137_s3, 4  ;;  %p655_p0 = pnand %p371_p13, %p622_p4  ;;  %s147_s4 = int_to_ptr.vmem [resolvable:$true] %s146_s4 }
  0x16   : > { %p346_p1 = scmp.ge.s32.totalorder %s561_s14, 1  ;;  %p168_p2 = scmp.lt.s32.totalorder %s561_s14, 3 }
  0x17   : > { %s134_s6 = scalar_lea.sflag [#allocation3], %s646_s25  ;;  %p423_p3 = pneg %p655_p0 }
  0x18   : > { %s434_s7 = scalar_lea.vmem %s147_s4, 128  ;;  %s563_s8 = smov [#allocation2]  }
  0x19   : > { %p435_p5 = scmp.ne.s32.totalorder %s147_s4, %s434_s7  ;;  %s439_s15 = sshll.u32 %s563_s8, 4  ;;  %s440_s15 = int_to_ptr.vmem [resolvable:$false] %s439_s15 }
  0x1a   : > { %s441_s16 = scalar_lea.vmem %s440_s15, 256  ;;  %p442_p4 = scmp.lt.s32.totalorder %s147_s4, %s440_s15 }
  0x1b   : > { %p437_p6 = pnand %p435_p5, %p423_p3  ;;  %p443_p10 = scmp.lt.s32.totalorder %s441_s16, %s434_s7 }
  0x1d   : > { %p438_p7 = pneg %p437_p6  ;;  %p444_p13 = por %p443_p10, %p442_p4 }
  0x1f   : > { %p445_p12 = pnand %p444_p13, %p438_p7 }
  0x21   : > { %448 = shalt.err (!%p445_p12)
}
  0x22   : > { %363 = dma.hbm_to_vmem [thread:$0]  (!%p655_p0), %s144_s30, 128, %s147_s4, %s134_s6  }
  0x23   : > { %p673_p5 = pnand %p346_p1, %p168_p2  ;;  %s345_s19 = sshll.u32 %s557_s13, 4 }
  0x24   : > { %s156_s20 = scalar_lea.vmem [#allocation5], %s646_s25  ;;  %s161_s29 = scalar_lea.hbm %s746_s1, %s345_s19 }
  0x25   : > { %s163_s26 = sshll.u32 %s156_s20, 4  ;;  %s154_s3 = scalar_lea.sflag [#allocation6], %s646_s25  ;;  %s164_s26 = int_to_ptr.vmem [resolvable:$true] %s163_s26 }
  0x26   : > { %s462_s7 = scalar_lea.vmem %s164_s26, 16  ;;  %s564_s30 = smov [#allocation5]  }
  0x27   : > { %p463_p12 = scmp.ne.s32.totalorder %s164_s26, %s462_s7  ;;  %s467_s4 = sshll.u32 %s564_s30, 4  ;;  %s468_s4 = int_to_ptr.vmem [resolvable:$false] %s467_s4 }
  0x28   : > { %s469_s6 = scalar_lea.vmem %s468_s4, 32  ;;  %p470_p1 = scmp.lt.s32.totalorder %s164_s26, %s468_s4 }
  0x29   : > { %p465_p6 = pnand %p463_p12, %p423_p3  ;;  %p471_p2 = scmp.lt.s32.totalorder %s469_s6, %s462_s7 }
  0x2b   : > { %p466_p7 = pneg %p465_p6  ;;  %p472_p4 = por %p471_p2, %p470_p1 }
  0x2d   : > { %p473_p10 = pnand %p472_p4, %p466_p7 }
  0x2f   : > { %476 = shalt.err (!%p473_p10)
}
  0x30   : > { %366 = dma.hbm_to_vmem [thread:$0]  (!%p655_p0), %s161_s29, 16, %s164_s26, %s154_s3  }
  0x31   : > { %172 = sbr.rel (%p673_p5) target bundleno = 81 (0x51), region = 28  ;;  %s691_s25 = sand.u32 (!%p673_p5), 1, %s545_s10  }
  0x32   : > { %s347_s8 = sshll.u32 (!%p673_p5), %s691_s25, 3  ;;  %s175_s15 = scalar_lea.sflag (!%p673_p5), [#allocation3], %s691_s25 }
  0x33   : > { %s178_s16 = scalar_lea.vmem (!%p673_p5), [#allocation2], %s347_s8 }
  0x36   : > { %528 = dma.done.wait (%p628_p8), %s175_s15, 128  }
  0x37   : > { %530 = vsyncadd (%p628_p8), %s175_s15, 4294967168  ;;  %s184_s5 = scalar_lea.sflag [#allocation6], %s691_s25  ;;  %s186_s18 = scalar_lea.vmem [#allocation5], %s691_s25 }
  0x38   : > { %532 = dma.done.wait (%p628_p8), %s184_s5, 16  }
  0x39   : > { %534 = vsyncadd (%p628_p8), %s184_s5, 4294967280  ;;  %s210_s19 = scalar_lea.vmem [#allocation7], %s347_s8  ;;  %s351_s26 = sshll.u32 %s553_s12, 7  ;;  %v211_v0 = vld [vmem:[%s178_s16] sm:$0xff] }
  0x3a   : > { %s237_s20 = sshll.u32 %s210_s19, 4  ;;  %v349_v1 = vld [vmem:[%s186_s18] ss:$0 sm:$0xff]  ;;  %s235_s29 = scalar_lea.hbm %s747_s2, %s351_s26  ;;  %s238_s20 = int_to_ptr.vmem [resolvable:$true] %s237_s20 }
  0x3b   : > { %v219_v2 = vmul.f32 %v349_v1, %v211_v0  ;;  %s222_s3 = scalar_lea.sflag [#allocation4], %s691_s25  ;;  %s477_s7 = scalar_lea.vmem %s238_s20, 128 }
  0x3c   : > { %p478_p0 = scmp.ne.s32.totalorder %s238_s20, %s477_s7  ;;  %s565_s21 = smov [#allocation7]  }
  0x3d   : > { %220 = vst [vmem:[%s210_s19] sm:$0xff] %v219_v2  ;;  %s481_s30 = sshll.u32 %s565_s21, 4  ;;  %s482_s30 = int_to_ptr.vmem [resolvable:$false] %s481_s30 }
  0x3e   : > { %p479_p8 = pnand %p478_p0, %p632_p9  ;;  %s483_s4 = scalar_lea.vmem %s482_s30, 256 }
  0x3f   : > { %p484_p13 = scmp.lt.s32.totalorder %s238_s20, %s482_s30  ;;  %p485_p5 = scmp.lt.s32.totalorder %s483_s4, %s477_s7 }
  0x40   : > { %p480_p3 = pneg %p479_p8 }
  0x41   : > { %p486_p12 = por %p485_p5, %p484_p13 }
  0x43   : > { %p487_p6 = pnand %p486_p12, %p480_p3 }
  0x45   : > { %490 = shalt.err (!%p487_p6)
}
  0x46   : > { %s491_s12 = scalar_lea.hbm %s235_s29, 128  ;;  %s495_s8 = scalar_lea.hbm %s747_s2, 256 }
  0x47   : > { %p492_p7 = scmp.ne.s32.totalorder %s235_s29, %s491_s12  ;;  %p496_p4 = scmp.lt.s32.totalorder %s235_s29, %s747_s2 }
  0x48   : > { %p497_p10 = scmp.lt.s32.totalorder %s495_s8, %s491_s12 }
  0x49   : > { %p493_p1 = pnand %p492_p7, %p632_p9 }
  0x4a   : > { %p498_p0 = por %p497_p10, %p496_p4 }
  0x4b   : > { %p494_p2 = pneg %p493_p1 }
  0x4d   : > { %p499_p8 = pnand %p498_p0, %p494_p2 }
  0x4f   : > { %502 = shalt.err (!%p499_p8)
}
  0x50   : > { %358 = dma.vmem_to_hbm [thread:$0]  (%p632_p9), %s238_s20, 128, %s235_s29, %s222_s3  }
  0x51 PF: > { %s249_s5 = sand.u32 1, %s541_s9   ;;  %p754_p3 = scmp.ge.s32.totalorder %s561_s14, 2 }
  0x52   : > { %s250_s18 = scalar_lea.sflag [#allocation4], %s249_s5 }
  0x53   : > { %p368_p13 = pnand %p754_p3, %p639_p11 }
  0x55   : > { %p369_p5 = pneg %p368_p13 }
  0x57   : > { %536 = dma.done.wait (%p369_p5), %s250_s18, 128  }
  0x58   : > { %538 = vsyncadd (%p369_p5), %s250_s18, 4294967168  ;;  %s21_s14 = sadd.s32 1, %s561_s14   ;;  %s755_s9 = smov %s545_s10 }
  0x59   : > { %p18_p12 = scmp.ge.s32.totalorder %s21_s14, 4   ;;  %s756_s10 = smov %s549_s11 }
  0x5a   : > { %s757_s11 = smov %s637_s23  ;;  %s758_s12 = smov %s557_s13 }
  0x5b   : > { %s759_s13 = smov %s761_s17  ;;  %20 = sbr.rel (!%p18_p12) target bundleno = 8 (0x8), region = 86 }
  0x60   :  { %255 = vsyncpa [#allocation3], 1 }
  0x61   :  { %257 = vsyncpa [#allocation3 + $0x1], 1 }
  0x62   :  { %258 = vsyncpa [#allocation6], 1 }
  0x63   :  { %260 = vsyncpa [#allocation6 + $0x1], 1 }
  0x64   :  { %261 = vsyncpa [#allocation4], 1 }
  0x65   :  { %263 = vsyncpa [#allocation4 + $0x1], 1 }

</bundles_post_ra>
